<compile_context>
chip_gen: v6e
topology: v6e:2x2x1
jax: 0.10.0
libtpu: 0.0.40
codegen_flags: <defaults>
</compile_context>

<pallas_src>
import functools

import jax
import jax.numpy as jnp
from jax.experimental import pallas as pl
from jax.experimental.pallas import tpu as pltpu

_MARGIN = 0.2          # hard-wired in the reference forward
_DIAG_PENALTY = 10.0   # "- 10 * eye" used to exclude the diagonal from the max


# --------------------------------------------------------------------------- helpers

def _vmem_budget_bytes():
    """Usable per-core VMEM budget: physical capacity minus compiler headroom."""
    cap = None
    try:
        info = pltpu.get_tpu_info()
        cap = getattr(info, "vmem_capacity_bytes", None)
    except Exception:
        cap = None
    if not cap:
        cap = 64 * 1024 * 1024  # conservative default: v7x per-TensorCore VMEM
    return max(int(cap) - 16 * 1024 * 1024, 16 * 1024 * 1024)


def _buffered_spec(shape, index_map, nbuf):
    """BlockSpec with optional >2-deep pipelining; falls back gracefully."""
    if nbuf > 2 and hasattr(pl, "Buffered"):
        try:
            return pl.BlockSpec(shape, index_map, pipeline_mode=pl.Buffered(nbuf))
        except TypeError:  # BlockSpec without pipeline_mode support
            pass
    return pl.BlockSpec(shape, index_map)


def _pick_streamed_tiling(B, D, isz_sum, budget, acc_bytes):
    """Largest lane-aligned k-slab (dividing D) that fits VMEM; pipeline depth."""
    slack = 4 << 20
    avail = budget - acc_bytes - slack
    if D % 128 != 0 or avail <= 0:
        return D, 2  # ragged feature dim (or no room): single k block
    tk = 128
    t = D
    while t >= 128:
        if D % t == 0 and 2 * B * t * isz_sum <= avail:
            tk = t
            break
        t -= 128
    grid_k = D // tk
    nbuf = 2
    if grid_k >= 4 and 3 * B * tk * isz_sum <= avail:
        nbuf = 3
    return tk, nbuf


# --------------------------------------------------------------------------- kernels

def _epilogue(s, is_hard):
    """Shared epilogue on the full (B, B) f32 similarity matrix -> scalar loss."""
    b = s.shape[0]
    row = jax.lax.broadcasted_iota(jnp.int32, (b, b), 0)
    col = jax.lax.broadcasted_iota(jnp.int32, (b, b), 1)
    diag = row == col

    # Diagonal (pos score) computed ONCE as a (B, 1) row-layout vector; the (1, B)
    # lane layout is derived with a tiny O(B) transpose rather than a second O(B^2)
    # cross-lane reduction (saves an XLU pass in the serial epilogue).
    pos_row = jnp.sum(jnp.where(diag, s, 0.0), axis=1, keepdims=True)   # (B, 1)
    pos_col = jnp.transpose(pos_row)                                    # (1, B)

    # Diagonal pushed down by 10 so it never wins the max (exactly as the reference).
    s_masked = jnp.where(diag, s - _DIAG_PENALTY, s)

    img_neg = jnp.max(s_masked, axis=1, keepdims=True)                  # (B, 1)
    if is_hard:
        txt_neg = jnp.max(s_masked, axis=0, keepdims=True)              # (1, B)
    else:
        txt_neg = jnp.mean(s, axis=0, keepdims=True)                    # (1, B)

    term_img = jnp.maximum(img_neg + _MARGIN - pos_row, 0.0)            # relu, (B, 1)
    term_txt = jnp.maximum(txt_neg + _MARGIN - pos_col, 0.0)            # relu, (1, B)

    return (jnp.sum(term_img) + jnp.sum(term_txt)) * (1.0 / b)


def _wino_single_kernel(img_ref, txt_ref, out_ref, *, is_hard):
    """Grid-less fused kernel: one MXU dot + epilogue, everything resident in VMEM."""
    s = jax.lax.dot_general(
        img_ref[...], txt_ref[...],
        dimension_numbers=(((1,), (1,)), ((), ())),
        preferred_element_type=jnp.float32,
    )
    out_ref[...] = _epilogue(s, is_hard).reshape(1, 1)


def _wino_streamed_kernel(img_ref, txt_ref, out_ref, acc_ref, *, is_hard):
    """k-streamed kernel: accumulate S into VMEM scratch; epilogue on last k step."""
    k = pl.program_id(0)

    @pl.when(k == 0)
    def _init():
        acc_ref[...] = jnp.zeros_like(acc_ref)

    # Partial similarity: S += X_tile @ Y_tile.T  (MXU, f32 accumulation).
    acc_ref[...] += jax.lax.dot_general(
        img_ref[...], txt_ref[...],
        dimension_numbers=(((1,), (1,)), ((), ())),
        preferred_element_type=jnp.float32,
    )

    @pl.when(k == pl.num_programs(0) - 1)
    def _finalize():
        out_ref[...] = _epilogue(acc_ref[...], is_hard).reshape(1, 1)


# --------------------------------------------------------------------------- wrappers

def _call_single(img, txt, is_hard, vmem_limit):
    kernel = functools.partial(_wino_single_kernel, is_hard=is_hard)
    out = pl.pallas_call(
        kernel,
        out_shape=jax.ShapeDtypeStruct((1, 1), jnp.float32),
        compiler_params=pltpu.CompilerParams(vmem_limit_bytes=int(vmem_limit)),
    )(img, txt)
    return out[0, 0]


def _call_streamed(img, txt, is_hard, tk, nbuf, vmem_limit):
    B, D = img.shape
    grid_k = pl.cdiv(D, tk)
    kernel = functools.partial(_wino_streamed_kernel, is_hard=is_hard)
    out = pl.pallas_call(
        kernel,
        out_shape=jax.ShapeDtypeStruct((1, 1), jnp.float32),
        grid_spec=pltpu.PrefetchScalarGridSpec(
            num_scalar_prefetch=0,
            grid=(grid_k,),
            in_specs=[
                _buffered_spec((B, tk), lambda k: (0, k), nbuf),  # image k-slab
                _buffered_spec((B, tk), lambda k: (0, k), nbuf),  # text  k-slab
            ],
            out_specs=pl.BlockSpec((1, 1), lambda k: (0, 0)),
            scratch_shapes=[pltpu.VMEM((B, B), jnp.float32)],
        ),
        compiler_params=pltpu.CompilerParams(
            dimension_semantics=("arbitrary",),  # k is a reduction axis
            vmem_limit_bytes=int(vmem_limit),
        ),
    )(img, txt)
    return out[0, 0]


def wino_loss(image_features, text_features, logit_scale=None, is_hard=True):
    """Pallas implementation of WinoLoss.forward.

    `logit_scale` is accepted but unused (as in the PyTorch reference).
    `is_hard` must be a static Python bool.
    """
    del logit_scale  # interface parity only; the reference forward never uses it
    B, D = image_features.shape
    assert text_features.shape == (B, D), (image_features.shape, text_features.shape)
    is_hard = bool(is_hard)

    isz_sum = (jnp.dtype(image_features.dtype).itemsize
               + jnp.dtype(text_features.dtype).itemsize)
    budget = _vmem_budget_bytes()
    acc_bytes = B * B * 4

    # Fast path: whole problem resident in VMEM -> single fused kernel, no grid.
    single_bytes = B * D * isz_sum + acc_bytes
    if single_bytes + (4 << 20) <= budget:
        vmem_limit = min(budget, max(32 << 20, single_bytes + (16 << 20)))
        return _call_single(image_features, text_features, is_hard, vmem_limit)

    # Streamed path: k-slabs over the feature dim, resident (B, B) accumulator.
    # TODO(synk): when B*B*4 exceeds the VMEM budget (B >~ 3-4k on v7x), tile the
    # accumulator over rows with a "parallel" row-tile grid axis (megacore) and
    # combine per-row-tile partial column max/mean in a small second pass.
    tk, nbuf = _pick_streamed_tiling(B, D, isz_sum, budget, acc_bytes)
    need = acc_bytes + nbuf * B * tk * isz_sum
    vmem_limit = min(budget, max(32 << 20, need + (16 << 20)))
    return _call_streamed(image_features, text_features, is_hard, tk, nbuf, vmem_limit)


# --------------------------------------------------------------------------- reference

def _wino_loss_ref(img, txt, is_hard):
    """Pure-JAX mirror of the PyTorch math, for verification."""
    b = img.shape[0]
    s = jnp.matmul(img, txt.T, precision=jax.lax.Precision.HIGHEST).astype(jnp.float32)
    pos = jnp.diag(s)
    eye = jnp.eye(b, dtype=s.dtype)
    img_neg = jnp.max(s - _DIAG_PENALTY * eye, axis=-1)
    st = s.T
    if is_hard:
        txt_neg = jnp.max(st - _DIAG_PENALTY * eye, axis=-1)
    else:
        txt_neg = jnp.mean(st, axis=-1)
    loss = (jnp.maximum(img_neg + _MARGIN - pos, 0.0)
            + jnp.maximum(txt_neg + _MARGIN - pos, 0.0))
    return jnp.mean(loss)


if __name__ == "__main__":
    # Small CLIP-style shapes. D = 1024 keeps both code paths cheap to exercise:
    # the auto path takes the grid-less fused kernel, and we additionally force the
    # k-streamed accumulator path (tk=256 -> 4 k steps, 3-deep pipelining).
    B, D = 16, 1024
    key = jax.random.PRNGKey(0)
    k1, k2 = jax.random.split(key, 2)

    def _l2norm(x):
        return x / jnp.linalg.norm(x, axis=-1, keepdims=True)

    image_features = _l2norm(jax.random.normal(k1, (B, D), jnp.float32))
    text_features = _l2norm(jax.random.normal(k2, (B, D), jnp.float32))
    logit_scale = jnp.float32(100.0)  # unused by forward; kept for interface parity

    for is_hard in (True, False):
        ref = _wino_loss_ref(image_features, text_features, is_hard)

        # Auto path (single-shot fused kernel at these sizes).
        loss = wino_loss(image_features, text_features, logit_scale, is_hard)
        jax.block_until_ready(loss)
        assert jnp.allclose(loss, ref, atol=5e-3, rtol=1e-3), ("auto", is_hard, loss, ref)

        # Explicitly exercise the k-streamed pipeline (init / accumulate / finalize).
        loss_s = _call_streamed(image_features, text_features, is_hard,
                                tk=256, nbuf=3, vmem_limit=32 * 1024 * 1024)
        jax.block_until_ready(loss_s)
        assert jnp.allclose(loss_s, ref, atol=5e-3, rtol=1e-3), ("stream", is_hard, loss_s, ref)

    print("KERNEL_OK")
</pallas_src>

<mosaic_0001>
module attributes {stable_mosaic.version = 11 : i64} {
  func.func @_wino_single_kernel(%arg0: memref<16x1024xf32, #tpu.memory_space<vmem>>, %arg1: memref<16x1024xf32, #tpu.memory_space<vmem>>, %arg2: memref<1x1xf32, #tpu.memory_space<vmem>>) attributes {dimension_semantics = [], scalar_prefetch = 0 : i64, scratch_operands = 0 : i64, tpu.core_type = #tpu.core_type<tc>} {
    %c0 = arith.constant 0 : index
    %c0_0 = arith.constant 0 : index
    %0 = vector.load %arg0[%c0, %c0_0] : memref<16x1024xf32, #tpu.memory_space<vmem>>, vector<16x1024xf32>
    %c0_1 = arith.constant 0 : index
    %c0_2 = arith.constant 0 : index
    %1 = vector.load %arg1[%c0_1, %c0_2] : memref<16x1024xf32, #tpu.memory_space<vmem>>, vector<16x1024xf32>
    %cst = arith.constant dense<0.000000e+00> : vector<16x16xf32>
    %2 = tpu.matmul %0, %1, %cst {dimension_numbers = #tpu.dot_dimension_numbers<[1], [1], [0], [0], [0, 0, 1, 0], [], []>} : vector<16x1024xf32>, vector<16x1024xf32>, vector<16x16xf32> -> vector<16x16xf32>
    %3 = tpu.iota {dimensions = array<i32: 0>} : vector<16x16xi32>
    %4 = tpu.iota {dimensions = array<i32: 1>} : vector<16x16xi32>
    %5 = arith.cmpi eq, %3, %4 : vector<16x16xi32>
    %cst_3 = arith.constant 0.000000e+00 : f32
    %6 = vector.broadcast %cst_3 : f32 to vector<16x16xf32>
    %7 = arith.select %5, %2, %6 : vector<16x16xi1>, vector<16x16xf32>
    %cst_4 = arith.constant dense<0.000000e+00> : vector<16xf32>
    %8 = vector.multi_reduction <add>, %7, %cst_4 [1] : vector<16x16xf32> to vector<16xf32>
    %9 = vector.shape_cast %8 : vector<16xf32> to vector<16x1xf32>
    %10 = tpu.transpose %9, [1, 0] : vector<16x1xf32> -> vector<1x16xf32>
    %cst_5 = arith.constant 1.000000e+01 : f32
    %11 = vector.broadcast %cst_5 : f32 to vector<16x16xf32>
    %12 = arith.subf %2, %11 : vector<16x16xf32>
    %13 = arith.select %5, %12, %2 : vector<16x16xi1>, vector<16x16xf32>
    %cst_6 = arith.constant dense<0xFF800000> : vector<16xf32>
    %14 = vector.multi_reduction <maximumf>, %13, %cst_6 [1] : vector<16x16xf32> to vector<16xf32>
    %15 = vector.shape_cast %14 : vector<16xf32> to vector<16x1xf32>
    %cst_7 = arith.constant dense<0xFF800000> : vector<16xf32>
    %16 = vector.multi_reduction <maximumf>, %13, %cst_7 [0] : vector<16x16xf32> to vector<16xf32>
    %17 = vector.shape_cast %16 : vector<16xf32> to vector<1x16xf32>
    %cst_8 = arith.constant 2.000000e-01 : f32
    %18 = vector.broadcast %cst_8 : f32 to vector<16x1xf32>
    %19 = arith.addf %15, %18 : vector<16x1xf32>
    %20 = arith.subf %19, %9 : vector<16x1xf32>
    %cst_9 = arith.constant 0.000000e+00 : f32
    %21 = vector.broadcast %cst_9 : f32 to vector<16x1xf32>
    %22 = arith.maximumf %20, %21 : vector<16x1xf32>
    %cst_10 = arith.constant 2.000000e-01 : f32
    %23 = vector.broadcast %cst_10 : f32 to vector<1x16xf32>
    %24 = arith.addf %17, %23 : vector<1x16xf32>
    %25 = arith.subf %24, %10 : vector<1x16xf32>
    %cst_11 = arith.constant 0.000000e+00 : f32
    %26 = vector.broadcast %cst_11 : f32 to vector<1x16xf32>
    %27 = arith.maximumf %25, %26 : vector<1x16xf32>
    %28 = vector.shape_cast %22 : vector<16x1xf32> to vector<1x16x1xf32>
    %cst_12 = arith.constant dense<0.000000e+00> : vector<1xf32>
    %29 = vector.multi_reduction <add>, %28, %cst_12 [1, 2] : vector<1x16x1xf32> to vector<1xf32>
    %30 = vector.shape_cast %29 : vector<1xf32> to vector<1x1x1xf32>
    %31 = vector.extract %30[0, 0, 0] : f32 from vector<1x1x1xf32>
    %32 = vector.shape_cast %27 : vector<1x16xf32> to vector<1x1x16xf32>
    %cst_13 = arith.constant dense<0.000000e+00> : vector<1xf32>
    %33 = vector.multi_reduction <add>, %32, %cst_13 [1, 2] : vector<1x1x16xf32> to vector<1xf32>
    %34 = vector.shape_cast %33 : vector<1xf32> to vector<1x1x1xf32>
    %35 = vector.extract %34[0, 0, 0] : f32 from vector<1x1x1xf32>
    %36 = arith.addf %31, %35 : f32
    %cst_14 = arith.constant 6.250000e-02 : f32
    %37 = arith.mulf %36, %cst_14 : f32
    %38 = vector.broadcast %37 : f32 to vector<1x1xf32>
    %c0_15 = arith.constant 0 : index
    %c0_16 = arith.constant 0 : index
    %39 = vector.load %arg2[%c0_15, %c0_16] : memref<1x1xf32, #tpu.memory_space<vmem>>, vector<1x1xf32>
    tpu.vector_store %arg2[%c0_15, %c0_16], %38 {strides = array<i32>} : memref<1x1xf32, #tpu.memory_space<vmem>>, vector<1x1xf32>,
    return
  }
}

</mosaic_0001>

<bundles_post_ra>
// kernel: tpu_custom_call.1
= control target key start
LH: loop header
LB: loop body
LE: loop exit
PB: predicated region body
PF: predicated region fallthrough
CT: control target
= control target key end

     0   :  { %7 = vsyncpa [#allocation3], 0  ;;  %s604_s0 = inlined_call_operand.hbm [shape: f32[16,1024], index: 0, kind: input, shape index: {}]   ;;  %s605_s1 = inlined_call_operand.hbm [shape: f32[16,1024], index: 1, kind: input, shape index: {}]   ;;  %s606_s2 = inlined_call_operand.hbm [shape: f32[1,1], index: 2, kind: output, shape index: {}]  }
   0x1   :  { %8 = vsyncpa [#allocation6], 0 }
   0x2   :  { %9 = vsyncpa [#allocation4], 0  ;;  %s569_s9 = smov [#allocation2]  }
   0x3   :  { %s15_s10 = sshll.u32 %s569_s9, 4  ;;  %s16_s10 = int_to_ptr.vmem [resolvable:$true] %s15_s10 }
   0x4   :  { %s511_s11 = scalar_lea.vmem %s16_s10, 2048  ;;  %p516_p1 = scmp.lt.s32.totalorder %s16_s10, %s16_s10 }
   0x5   :  { %p512_p0 = scmp.ne.s32.totalorder %s16_s10, %s511_s11  ;;  %p517_p2 = scmp.lt.s32.totalorder %s511_s11, %s511_s11 }
   0x7   :  { %p518_p3 = por %p517_p2, %p516_p1 }
   0x9   :  { %p519_p4 = pnand %p518_p3, %p512_p0 }
   0xb   :  { %522 = shalt.err (!%p519_p4)
}
   0xc   :  { %s570_s12 = smov 1024   ;;  %s571_s13 = smov 64  }
   0xd   :  { %21 = dma.hbm_to_vmem [thread:$0]  %s604_s0, 2048, %s16_s10, [#allocation3], %s570_s12, %s570_s12, %s571_s13  }
   0xe   :  { %s572_s16 = smov [#allocation5]  }
   0xf   :  { %s27_s17 = sshll.u32 %s572_s16, 4  ;;  %s28_s17 = int_to_ptr.vmem [resolvable:$true] %s27_s17 }
  0x10   :  { %s531_s18 = scalar_lea.vmem %s28_s17, 2048  ;;  %p536_p6 = scmp.lt.s32.totalorder %s28_s17, %s28_s17 }
  0x11   :  { %p532_p5 = scmp.ne.s32.totalorder %s28_s17, %s531_s18  ;;  %p537_p7 = scmp.lt.s32.totalorder %s531_s18, %s531_s18 }
  0x13   :  { %p538_p8 = por %p537_p7, %p536_p6 }
  0x15   :  { %p539_p9 = pnand %p538_p8, %p532_p5 }
  0x17   :  { %542 = shalt.err (!%p539_p9)
}
  0x18   :  { %33 = dma.hbm_to_vmem [thread:$0]  %s605_s1, 2048, %s28_s17, [#allocation6], %s570_s12, %s570_s12, %s571_s13  }
  0x19   :  { %563 = dma.done.wait [#allocation3], 2048  }
  0x1a   :  { %564 = vsyncadd [#allocation3], 4294965248 }
  0x1b   :  { %565 = dma.done.wait [#allocation6], 2048  }
  0x1c   :  { %566 = vsyncadd [#allocation6], 4294965248  ;;  %v65_v0 = vld [vmem:[#allocation5 + $0x48] sm:$0xff]  ;;  %v64_v1 = vld [vmem:[#allocation5 + $0x40] sm:$0xff]  ;;  %v372_v36 = vlaneseq  ;;  %vm381_vm1 = vcmask 130048   ;;  %vm446_vm3 = vcmask 7168  }
  0x1d   :  { %v67_v2 = vld [vmem:[#allocation5 + $0x58] sm:$0xff]  ;;  %100 = vmatprep.subr.mxu0 %v65_v0  ;;  %v66_v3 = vld [vmem:[#allocation5 + $0x50] sm:$0xff]  ;;  %v57_v4 = vld [vmem:[#allocation5 + $0x8] sm:$0xff]  ;;  %vm459_vm4 = vcmask 122880   ;;  %s573_s22 = smov [#allocation7]   ;;  %vm473_vm5 = vcmask 0  }
  0x1e   :  { %175 = vmatprep.subr.mxu1 %v67_v2  ;;  %101 = vmatpush1.xpose.msra.mxu0 %v64_v1  ;;  %v59_v5 = vld [vmem:[#allocation5 + $0x18] sm:$0xff]  ;;  %v41_v6 = vld [vmem:[#allocation2 + $0x8] sm:$0xff]  ;;  %v56_v7 = vld [vmem:[#allocation5] sm:$0xff]  ;;  %v373_v41 = vshrl.u32 %v372_v36, 7  ;;  %v376_v42 = vand.u32 127, %v372_v36  ;;  %s481_s23 = sshll.u32 %s573_s22, 4  ;;  %s482_s23 = int_to_ptr.vmem [resolvable:$true] %s481_s23 }
  0x1f   :  { %176 = vmatpush1.xpose.msra.mxu1 %v66_v3  ;;  %102 = vmatprep.subr.mxu0 %v57_v4  ;;  %v58_v8 = vld [vmem:[#allocation5 + $0x10] sm:$0xff]  ;;  %v43_v9 = vld [vmem:[#allocation2 + $0x18] sm:$0xff]  ;;  %v69_v10 = vld [vmem:[#allocation5 + $0x68] sm:$0xff]  ;;  %s543_s25 = scalar_lea.vmem %s482_s23, 16  ;;  %s547_s26 = scalar_lea.vmem %s482_s23, 32 }
  0x20   :  { %177 = vmatprep.subr.mxu1 %v59_v5  ;;  %136 = vmatprep.mubr.f32.mxu0 %v41_v6  ;;  %v71_v11 = vld [vmem:[#allocation5 + $0x78] sm:$0xff]  ;;  %v40_v12 = vld [vmem:[#allocation2] sm:$0xff]  ;;  %v42_v13 = vld [vmem:[#allocation2 + $0x10] sm:$0xff]  ;;  %vm377_vm0 = vcmp.eq.s32.totalorder %v373_v41, %v376_v42  ;;  %v374_v49 = vadd.s32 8, %v373_v41  ;;  %p544_p10 = scmp.ne.s32.totalorder %s482_s23, %s543_s25  ;;  %p548_p11 = scmp.lt.s32.totalorder %s482_s23, %s482_s23 }
  0x21   :  { %211 = vmatprep.mubr.f32.mxu1 %v43_v9  ;;  %v68_v14 = vld [vmem:[#allocation5 + $0x60] sm:$0xff]  ;;  %v70_v15 = vld [vmem:[#allocation5 + $0x70] sm:$0xff]  ;;  %v49_v16 = vld [vmem:[#allocation2 + $0x48] sm:$0xff]  ;;  %p549_p12 = scmp.lt.s32.totalorder %s547_s26, %s543_s25 }
  0x22   :  { %103 = vmatpush1.xpose.msra.mxu0 %v56_v7  ;;  %v51_v17 = vld [vmem:[#allocation2 + $0x58] sm:$0xff]  ;;  %v61_v18 = vld [vmem:[#allocation5 + $0x28] sm:$0xff]  ;;  %v48_v20 = vld [vmem:[#allocation2 + $0x40] sm:$0xff]  ;;  %vm378_vm2 = vcmp.eq.s32.totalorder %v374_v49, %v376_v42 }
  0x23   :  { %178 = vmatpush1.xpose.msra.mxu1 %v58_v8  ;;  %250 = vmatprep.subr.mxu0 %v69_v10  ;;  %v63_v19 = vld [vmem:[#allocation5 + $0x38] sm:$0xff]  ;;  %v50_v21 = vld [vmem:[#allocation2 + $0x50] sm:$0xff]  ;;  %v60_v22 = vld [vmem:[#allocation5 + $0x20] sm:$0xff]  ;;  %p550_p13 = por %p549_p12, %p548_p11 }
  0x24   :  { %325 = vmatprep.subr.mxu1 %v71_v11  ;;  %v62_v23 = vld [vmem:[#allocation5 + $0x30] sm:$0xff]  ;;  %v45_v24 = vld [vmem:[#allocation2 + $0x28] sm:$0xff]  ;;  %v47_v25 = vld [vmem:[#allocation2 + $0x38] sm:$0xff] }
  0x25   :  { %137 = vmatmul.mubr.f32.vlgmr.msra.gmra.mxu0 %v40_v12  ;;  %v44_v26 = vld [vmem:[#allocation2 + $0x20] sm:$0xff]  ;;  %v46_v27 = vld [vmem:[#allocation2 + $0x30] sm:$0xff]  ;;  %v53_v28 = vld [vmem:[#allocation2 + $0x68] sm:$0xff]  ;;  %p551_p0 = pnand %p550_p13, %p544_p10 }
  0x26   :  { %212 = vmatmul.mubr.f32.vlgmr.msra.gmra.mxu1 %v42_v13  ;;  %251 = vmatpush1.xpose.msra.mxu0 %v68_v14  ;;  %v55_v29 = vld [vmem:[#allocation2 + $0x78] sm:$0xff]  ;;  %v52_v30 = vld [vmem:[#allocation2 + $0x60] sm:$0xff]  ;;  %v54_v31 = vld [vmem:[#allocation2 + $0x70] sm:$0xff] }
  0x27   :  { %326 = vmatpush1.xpose.msra.mxu1 %v70_v15  ;;  %141 = vmatprep.mubr.f32.mxu0 %v49_v16 }
  0x28   :  { %216 = vmatprep.mubr.f32.mxu1 %v51_v17  ;;  %252 = vmatprep.subr.mxu0 %v61_v18 }
  0x29   :  { %327 = vmatprep.subr.mxu1 %v63_v19  ;;  %142 = vmatmul.mubr.f32.gmra.mxu0 %v48_v20 }
  0x2a   :  { %217 = vmatmul.mubr.f32.gmra.mxu1 %v50_v21  ;;  %253 = vmatpush1.xpose.msra.mxu0 %v60_v22 }
  0x2b   :  { %328 = vmatpush1.xpose.msra.mxu1 %v62_v23  ;;  %286 = vmatprep.mubr.f32.mxu0 %v45_v24 }
  0x2c   :  { %361 = vmatprep.mubr.f32.mxu1 %v47_v25 }
  0x2d   :  { %287 = vmatmul.mubr.f32.vlgmr.msra.gmra.mxu0 %v44_v26 }
  0x2e   :  { %362 = vmatmul.mubr.f32.vlgmr.msra.gmra.mxu1 %v46_v27  ;;  %291 = vmatprep.mubr.f32.mxu0 %v53_v28 }
  0x2f   :  { %366 = vmatprep.mubr.f32.mxu1 %v55_v29 }
  0x31   :  { %292 = vmatmul.mubr.f32.gmra.mxu0 %v52_v30 }
  0x32   :  { %367 = vmatmul.mubr.f32.gmra.mxu1 %v54_v31 }
  0xe5   :  { %v138_v32 = vpop.f32.mrf.mxu0 }
  0xe6   :  { %v213_v33 = vpop.f32.mrf.mxu1 }
  0xe7   :  { %v140_v34 = vpop.f32.mrf.mxu0  ;;  %v214_v43 = vadd.f32 %v213_v33, %v138_v32 }
  0xe8   :  { %v215_v35 = vpop.f32.mrf.mxu1 }
  0xe9   :  { %v143_v37 = vpop.f32.mrf.mxu0 }
  0xea   :  { %v218_v38 = vpop.f32.mrf.mxu1 }
  0xeb   :  { %v145_v39 = vpop.f32.mrf.mxu0  ;;  %v219_v50 = vadd.f32 %v218_v38, %v143_v37 }
  0xec   :  { %v220_v40 = vpop.f32.mrf.mxu1 }
  0xed   :  { %v288_v44 = vpop.f32.mrf.mxu0 }
  0xee   :  { %v363_v45 = vpop.f32.mrf.mxu1  ;;  %v289_v46 = vadd.f32 %v288_v44, %v214_v43 }
  0xef   :  { %v290_v47 = vpop.f32.mrf.mxu0 }
  0xf0   :  { %v365_v48 = vpop.f32.mrf.mxu1  ;;  %v364_v51 = vadd.f32 %v363_v45, %v289_v46 }
  0xf1   :  { %v293_v52 = vpop.f32.mrf.mxu0 }
  0xf2   :  { %v368_v53 = vpop.f32.mrf.mxu1  ;;  %v491_v54 = vadd.f32 -10.0, %v364_v51  ;;  %v294_v55 = vadd.f32 %v293_v52, %v219_v50  ;;  %v379_v56 = vsel %vm377_vm0, %v364_v51, 0.0 }
  0xf3   :  { %v295_v57 = vpop.f32.mrf.mxu0  ;;  %v382_v59 = vsel %vm381_vm1, %v379_v56, 0.0 }
  0xf4   :  { %v370_v58 = vpop.f32.mrf.mxu1  ;;  %v369_v60 = vadd.f32 %v368_v53, %v294_v55  ;;  %383 = vadd.xlane.f32.xlu0 %v382_v59  ;;  %v422_v61 = vsel %vm377_vm0, %v491_v54, %v364_v51 }
  0xf5   :  { %v424_v62 = vsel %vm381_vm1, %v422_v61, -inf }
  0xf6   :  { %v492_v63 = vadd.f32 -10.0, %v369_v60  ;;  %425 = vmax.xlane.f32.xlu1 %v424_v62  ;;  %v380_v0 = vsel %vm378_vm2, %v369_v60, 0.0 }
  0xf7   :  { %v385_v1 = vsel %vm381_vm1, %v380_v0, 0.0 }
  0xf8   :  { %386 = vadd.xlane.f32.xlu0 %v385_v1  ;;  %v423_v2 = vsel %vm378_vm2, %v492_v63, %v369_v60 }
  0xf9   :  { %v427_v3 = vsel %vm381_vm1, %v423_v2, -inf }
  0xfa   :  { %428 = vmax.xlane.f32.xlu1 %v427_v3  ;;  %v430_v4 = vmax.f32 %v424_v62, %v427_v3 }
  0xfc   :  { %v431_v18 = vrot.slane %v430_v4, 4 }
  0xfe   :  { %v432_v19 = vmax.f32 %v430_v4, %v431_v18 }
 0x100   :  { %v433_v20 = vrot.slane %v432_v19, 2 }
 0x102   :  { %v434_v21 = vmax.f32 %v432_v19, %v433_v20 }
 0x104   :  { %v435_v22 = vrot.slane %v434_v21, 1 }
 0x106   :  { %v436_v23 = vmax.f32 %v434_v21, %v435_v22 }
 0x108   :  { %v443_v24 = vadd.f32 0.2, %v436_v23 }
 0x17d   :  { %v384_v5 = vpop.xlane.xlu0 %383 }
 0x17e   :  { %388 = vxpose.xlu0.b32.start [1/2] (short) (narrow) %v384_v5, 8 }
 0x17f   :  { %v426_v6 = vpop.xlane.xlu1 %425 }
 0x180   :  { %v437_v7 = vadd.f32 0.2, %v426_v6 }
 0x181   :  { %v387_v8 = vpop.xlane.xlu0 %386 }
 0x182   :  { %v439_v9 = vsub.f32 %v437_v7, %v384_v5  ;;  %389 = vxpose.xlu0.b32.end [2/2] (short) (narrow) %v387_v8, 8 }
 0x183   :  { %v429_v10 = vpop.xlane.xlu1 %428 }
 0x184   :  { %v438_v11 = vadd.f32 0.2, %v429_v10  ;;  %v441_v12 = vmax.f32 %v439_v9, 0.0 }
 0x186   :  { %v440_v13 = vsub.f32 %v438_v11, %v387_v8  ;;  %v447_v15 = vsel %vm446_vm3, %v441_v12, 0.0 }
 0x188   :  { %v442_v14 = vmax.f32 %v440_v13, 0.0 }
 0x18a   :  { %v448_v16 = vsel %vm446_vm3, %v442_v14, 0.0 }
 0x18b   :  { %v449_v17 = vadd.f32 %v448_v16, %v447_v15 }
 0x18d   :  { %450 = vadd.xlane.f32.xlu1 %v449_v17 }
 0x1fa   :  { %v404_v25 = vpop.trf.xlu0 }
 0x1fb   :  { %v444_v26 = vsub.f32 %v443_v24, %v404_v25 }
 0x1fd   :  { %v445_v27 = vmax.f32 %v444_v26, 0.0 }
 0x1ff   :  { %v460_v28 = vsel %vm459_vm4, %v445_v27, 0.0 }
 0x200   :  { %461 = vadd.xlane.f32.xlu1 %v460_v28 }
 0x216   :  { %v451_v29 = vpop.xlane.xlu1 %450 }
 0x217   :  { %v452_v30 = vrot.slane %v451_v29, 4 }
 0x219   :  { %v453_v31 = vadd.f32 %v452_v30, %v451_v29 }
 0x21b   :  { %v454_v32 = vrot.slane %v453_v31, 2 }
 0x21d   :  { %v455_v33 = vadd.f32 %v454_v32, %v453_v31 }
 0x21f   :  { %v456_v34 = vrot.slane %v455_v33, 1 }
 0x221   :  { %v457_v35 = vadd.f32 %v456_v34, %v455_v33 }
 0x223   :  { %493 = vpush %v457_v35 }
 0x254   :  { %s494_s0 = spop %493 }
 0x289   :  { %v462_v36 = vpop.xlane.xlu1 %461 }
 0x28a   :  { %v463_v37 = vrot.slane %v462_v36, 4 }
 0x28c   :  { %v464_v38 = vadd.f32 %v463_v37, %v462_v36 }
 0x28e   :  { %v465_v39 = vrot.slane %v464_v38, 2 }
 0x290   :  { %v466_v40 = vadd.f32 %v465_v39, %v464_v38 }
 0x292   :  { %v467_v41 = vrot.slane %v466_v40, 1 }
 0x294   :  { %v468_v42 = vadd.f32 %v467_v41, %v466_v40 }
 0x296   :  { %495 = vpush %v468_v42 }
 0x2c7   :  { %s496_s1 = spop %495 }
 0x2c8   :  { %s470_s21 = sadd.f32 %s496_s1, %s494_s0 }
 0x2ca   :  { %s471_s24 = smul.f32 0.0625, %s470_s21 }
 0x2cc   :  { %v472_v43 = vstv %s471_s24 }
 0x2cd   :  { %474 = vst.msk [vmem:[#allocation7] sm:$0x1] %vm473_vm5, %v472_v43 }
 0x2ce   :  { %554 = shalt.err (!%p551_p0)
}
 0x2cf   :  { %484 = dma.vmem_to_hbm [thread:$0]  %s482_s23, 16, %s606_s2, [#allocation4]  }
 0x2d0   :  { %567 = dma.done.wait [#allocation4], 16  }
 0x2d1   :  { %568 = vsyncadd [#allocation4], 4294967280 }
 0x2d2   :  { %488 = vsyncpa [#allocation3], 1 }
 0x2d3   :  { %489 = vsyncpa [#allocation6], 1 }
 0x2d4   :  { %490 = vsyncpa [#allocation4], 1 }

</bundles_post_ra>
